<compile_context>
chip_gen: v6e
topology: v6e:2x2x1
jax: 0.10.0
libtpu: 0.0.40
codegen_flags: <defaults>
</compile_context>

<pallas_src>
import jax
import jax.numpy as jnp
from jax.experimental import pallas as pl
from jax.experimental.pallas import tpu as pltpu

# Synthetic bittensor constants (bittensor.__network_dim__ is 512 in the repo;
# use a small (8,128)-aligned value here).
NETWORK_DIM = 128
SUCCESS_CODE = 1          # bittensor.proto.ReturnCode.Success
TILE_BS = 1024            # rows of batch*seq per grid step (f32 out tile = 512 KiB)


def _dendrite_kernel(codes_ref, x_ref, w_ref, o_ref):
    """One grid step == one (neuron, BS-tile) pair.

    codes_ref : SMEM int32[num_neurons]   (scalar-prefetched return codes)
    x_ref     : VMEM bf16[TILE, D]        (this neuron's input tile)
    w_ref     : VMEM bf16[D, D]           (this neuron's synthetic encoder)
    o_ref     : VMEM f32 [TILE, D]        (this neuron's response tile / zeros)
    """
    # Return-code index is the *neuron* grid axis, not the flattened step.
    code = codes_ref[pl.program_id(0)]

    @pl.when(code == SUCCESS_CODE)
    def _():
        o_ref[...] = jnp.dot(
            x_ref[...], w_ref[...], preferred_element_type=jnp.float32
        ).astype(o_ref.dtype)

    @pl.when(code != SUCCESS_CODE)
    def _():
        # Non-responses are zeros of common shape; skip the matmul entirely.
        o_ref[...] = jnp.zeros_like(o_ref)


def dendrite_forward_tensor(x_stack, weights, return_codes, *, tile_bs=TILE_BS):
    """Pallas equivalent of Dendrite.forward_tensor.

    Args:
      x_stack:      f32[num_neurons, batch, seq, NETWORK_DIM]  (stacked inputs)
      weights:      f32[num_neurons, NETWORK_DIM, NETWORK_DIM] (synthetic encoders)
      return_codes: int32[num_neurons]  (SUCCESS_CODE == success, else non-response)

    Returns:
      (f32[num_neurons, batch, seq, NETWORK_DIM], int32[num_neurons])
      Callers that want the per-neuron list (as in the torch module) can split
      the leading axis lazily.
    """
    num_neurons, batch, seq, dim = x_stack.shape
    assert dim == NETWORK_DIM
    bs = batch * seq

    # Single reshape + bf16 cast (halves HBM traffic; MXU accumulates in f32).
    x2 = x_stack.reshape(num_neurons, bs, dim).astype(jnp.bfloat16)
    w2 = weights.astype(jnp.bfloat16)

    # BS tile: at most tile_bs rows, multiple of 8 sublanes, padded if ragged.
    tile = min(tile_bs, max(8, ((bs + 7) // 8) * 8))
    bs_pad = pl.cdiv(bs, tile) * tile
    if bs_pad != bs:
        x2 = jnp.pad(x2, ((0, 0), (0, bs_pad - bs), (0, 0)))
    n_tiles = bs_pad // tile

    out = pl.pallas_call(
        _dendrite_kernel,
        out_shape=jax.ShapeDtypeStruct((num_neurons, bs_pad, dim), jnp.float32),
        grid_spec=pltpu.PrefetchScalarGridSpec(
            num_scalar_prefetch=1,                 # return_codes -> SMEM
            grid=(num_neurons, n_tiles),
            in_specs=[
                # Leading size-1 neuron dim squeezed -> kernel sees (tile, dim).
                pl.BlockSpec((None, tile, dim), lambda n, b, codes: (n, b, 0)),
                # Weight block index constant along b -> stays resident per neuron.
                pl.BlockSpec((None, dim, dim), lambda n, b, codes: (n, 0, 0)),
            ],
            out_specs=pl.BlockSpec((None, tile, dim), lambda n, b, codes: (n, b, 0)),
        ),
        compiler_params=pltpu.CompilerParams(
            # Both axes independent -> v7x dual-TensorCore sharding.
            dimension_semantics=("parallel", "parallel"),
            # Explicit, generation-safe VMEM budget (v7x physical VMEM is 64 MiB).
            vmem_limit_bytes=64 * 1024 * 1024,
        ),
        cost_estimate=pl.CostEstimate(
            flops=2 * num_neurons * bs_pad * dim * dim,
            transcendentals=0,
            bytes_accessed=(x2.size * 2 + w2.size * 2
                            + num_neurons * bs_pad * dim * 4),
        ),
    )(return_codes, x2, w2)

    if bs_pad != bs:
        out = out[:, :bs, :]
    return out.reshape(num_neurons, batch, seq, dim), return_codes


if __name__ == "__main__":
    key = jax.random.PRNGKey(0)
    num_neurons = 3
    batch, seq, dim = 2, 8, NETWORK_DIM

    k_x, k_w = jax.random.split(key)
    # Stacked per-neuron inputs [num_neurons, batch, seq, dim].
    xs_all = jax.random.normal(k_x, (num_neurons, batch, seq, dim), jnp.float32)

    # Deterministic synthetic per-neuron encoder weights.
    weights = (jax.random.normal(k_w, (num_neurons, dim, dim), jnp.float32)
               / jnp.sqrt(jnp.float32(dim)))

    # Simulated return codes: neuron 1 fails -> its output must be zeros.
    return_codes = jnp.array([SUCCESS_CODE, 0, SUCCESS_CODE], dtype=jnp.int32)

    out, codes = dendrite_forward_tensor(xs_all, weights, return_codes)
    out = jax.block_until_ready(out)
    codes = jax.block_until_ready(codes)

    # Reference (pure JAX) matching the bf16-input / f32-accumulate MXU path.
    ref = jnp.einsum(
        "nbsd,nde->nbse",
        xs_all.astype(jnp.bfloat16),
        weights.astype(jnp.bfloat16),
        preferred_element_type=jnp.float32,
    )
    mask = (return_codes == SUCCESS_CODE).astype(jnp.float32)[:, None, None, None]
    ref = ref * mask

    if bool(jnp.allclose(out, ref, atol=2e-2, rtol=2e-2)):
        print("KERNEL_OK")
    else:
        print("MISMATCH")
</pallas_src>

<mosaic_0001>
module attributes {stable_mosaic.version = 11 : i64} {
  func.func @_dendrite_kernel(%arg0: i32, %arg1: i32, %arg2: memref<3xi32, #tpu.memory_space<smem>>, %arg3: memref<1x16x128xbf16, #tpu.memory_space<vmem>>, %arg4: memref<1x128x128xbf16, #tpu.memory_space<vmem>>, %arg5: memref<1x16x128xf32, #tpu.memory_space<vmem>>) attributes {dimension_semantics = [#tpu.dimension_semantics<parallel>, #tpu.dimension_semantics<parallel>], iteration_bounds = array<i64: 3, 1>, scalar_prefetch = 1 : i64, scratch_operands = 0 : i64, tpu.core_type = #tpu.core_type<tc>, window_params = [{transform_indices = @transform_0, window_bounds = array<i64: 1, 16, 128>}, {transform_indices = @transform_1, window_bounds = array<i64: 1, 128, 128>}, {transform_indices = @transform_2, window_bounds = array<i64: 1, 16, 128>}]} {
    %0 = arith.index_cast %arg0 : i32 to index
    %1 = memref.load %arg2[%0] : memref<3xi32, #tpu.memory_space<smem>>
    %c1_i32 = arith.constant 1 : i32
    %2 = arith.cmpi eq, %1, %c1_i32 : i32
    %3 = arith.extui %2 : i1 to i32
    %c0_i32 = arith.constant 0 : i32
    %4 = arith.cmpi ne, %3, %c0_i32 : i32
    scf.if %4 {
      %c0 = arith.constant 0 : index
      %c0_2 = arith.constant 0 : index
      %c0_3 = arith.constant 0 : index
      %8 = vector.load %arg3[%c0, %c0_2, %c0_3] : memref<1x16x128xbf16, #tpu.memory_space<vmem>>, vector<1x16x128xbf16>
      %9 = vector.shape_cast %8 : vector<1x16x128xbf16> to vector<16x128xbf16>
      %c0_4 = arith.constant 0 : index
      %c0_5 = arith.constant 0 : index
      %c0_6 = arith.constant 0 : index
      %10 = vector.load %arg4[%c0_4, %c0_5, %c0_6] : memref<1x128x128xbf16, #tpu.memory_space<vmem>>, vector<1x128x128xbf16>
      %11 = vector.shape_cast %10 : vector<1x128x128xbf16> to vector<128x128xbf16>
      %cst = arith.constant dense<0.000000e+00> : vector<16x128xf32>
      %12 = tpu.matmul %9, %11, %cst {dimension_numbers = #tpu.dot_dimension_numbers<[1], [0], [0], [1], [0, 0, 1, 1], [], []>} : vector<16x128xbf16>, vector<128x128xbf16>, vector<16x128xf32> -> vector<16x128xf32>
      %c0_7 = arith.constant 0 : index
      %c0_8 = arith.constant 0 : index
      %c0_9 = arith.constant 0 : index
      %13 = vector.load %arg5[%c0_7, %c0_8, %c0_9] : memref<1x16x128xf32, #tpu.memory_space<vmem>>, vector<1x16x128xf32>
      %14 = vector.shape_cast %13 : vector<1x16x128xf32> to vector<16x128xf32>
      %15 = vector.shape_cast %12 : vector<16x128xf32> to vector<1x16x128xf32>
      tpu.vector_store %arg5[%c0_7, %c0_8, %c0_9], %15 {strides = array<i32>} : memref<1x16x128xf32, #tpu.memory_space<vmem>>, vector<1x16x128xf32>,
    } else {
    }
    %c1_i32_0 = arith.constant 1 : i32
    %5 = arith.cmpi ne, %1, %c1_i32_0 : i32
    %6 = arith.extui %5 : i1 to i32
    %c0_i32_1 = arith.constant 0 : i32
    %7 = arith.cmpi ne, %6, %c0_i32_1 : i32
    scf.if %7 {
      %cst = arith.constant 0.000000e+00 : f32
      %8 = vector.broadcast %cst : f32 to vector<16x128xf32>
      %c0 = arith.constant 0 : index
      %c0_2 = arith.constant 0 : index
      %c0_3 = arith.constant 0 : index
      %9 = vector.load %arg5[%c0, %c0_2, %c0_3] : memref<1x16x128xf32, #tpu.memory_space<vmem>>, vector<1x16x128xf32>
      %10 = vector.shape_cast %9 : vector<1x16x128xf32> to vector<16x128xf32>
      %11 = vector.shape_cast %8 : vector<16x128xf32> to vector<1x16x128xf32>
      tpu.vector_store %arg5[%c0, %c0_2, %c0_3], %11 {strides = array<i32>} : memref<1x16x128xf32, #tpu.memory_space<vmem>>, vector<1x16x128xf32>,
    } else {
    }
    return
  }
  func.func @transform_0(%arg0: i32, %arg1: i32, %arg2: memref<3xi32, #tpu.memory_space<smem>>) -> (i32, i32, i32) {
    %c0_i32 = arith.constant 0 : i32
    %c0_i32_0 = arith.constant 0 : i32
    return %arg0, %arg1, %c0_i32 : i32, i32, i32
  }
  func.func @transform_1(%arg0: i32, %arg1: i32, %arg2: memref<3xi32, #tpu.memory_space<smem>>) -> (i32, i32, i32) {
    %c0_i32 = arith.constant 0 : i32
    %c0_i32_0 = arith.constant 0 : i32
    %c0_i32_1 = arith.constant 0 : i32
    return %arg0, %c0_i32, %c0_i32_0 : i32, i32, i32
  }
  func.func @transform_2(%arg0: i32, %arg1: i32, %arg2: memref<3xi32, #tpu.memory_space<smem>>) -> (i32, i32, i32) {
    %c0_i32 = arith.constant 0 : i32
    %c0_i32_0 = arith.constant 0 : i32
    return %arg0, %arg1, %c0_i32 : i32, i32, i32
  }
}

</mosaic_0001>

<bundles_post_ra>
// kernel: tpu_custom_call.1
= control target key start
LH: loop header
LB: loop body
LE: loop exit
PB: predicated region body
PF: predicated region fallthrough
CT: control target
= control target key end

     0   :  { %s778_s12 = smov [#allocation3]   ;;  %s1012_s0 = inlined_call_operand.hbm [shape: s32[3], index: 0, kind: input, shape index: {}]   ;;  %s1013_s1 = inlined_call_operand.hbm [shape: bf16[3,16,128], index: 1, kind: input, shape index: {}]   ;;  %s1014_s2 = inlined_call_operand.hbm [shape: bf16[3,128,128], index: 2, kind: input, shape index: {}]   ;;  %s1015_s3 = inlined_call_operand.hbm [shape: f32[3,16,128], index: 3, kind: output, shape index: {}]  }
   0x1   :  { %9 = dma.hbm_to_smem %s1012_s0, 16, %s778_s12, [#allocation2] }
   0x2   :  { %740 = dma.done.wait [#allocation2], 16 }
   0x3   :  { %741 = vsyncadd [#allocation2], 4294967280 }
   0x4   :  { %11 = sfence }
   0x5   :  { %12 = vsyncpa [#allocation5], 0 }
   0x6   :  { %14 = vsyncpa [#allocation5 + $0x1], 0 }
   0x7   :  { %15 = vsyncpa [#allocation8], 0 }
   0x8   :  { %17 = vsyncpa [#allocation8 + $0x1], 0 }
   0x9   :  { %18 = vsyncpa [#allocation6], 0 }
   0xa   :  { %20 = vsyncpa [#allocation6 + $0x1], 0  ;;  %s812_s15 = smov 0   ;;  %s814_s16 = smov 0  }
   0xb   :  { %s816_s17 = smov 0   ;;  %s818_s18 = smov 0  }
   0xc   :  { %s820_s19 = smov 0   ;;  %s822_s0 = smov 0  }
   0xd LB: > { %s480_s20 = sadd.s32 4294967295, %s776_s0   ;;  %s481_s21 = sadd.s32 4294967294, %s776_s0   ;;  %s776_s0 = sphi %s822_s0, %s26_s0   ;;  %s772_s19 = sphi %s820_s19, %s1026_s19   ;;  %s768_s18 = sphi %s818_s18, %s1025_s18   ;;  %s764_s17 = sphi %s816_s17, %s1024_s17   ;;  %s760_s16 = sphi %s814_s16, %s1023_s16   ;;  %s756_s15 = sphi %s812_s15, %s1022_s15  }
   0xe   : > { %s38_s22 = sadd.s32 1, %s772_s19  ;;  %s47_s23 = sadd.s32 1, %s764_s17 }
   0xf   : > { %p40_p0 = scmp.ge.s32.totalorder %s38_s22, 3  ;;  %p54_p1 = scmp.ne.s32.totalorder %s764_s17, %s760_s16 }
  0x10   : > { %p55_p2 = scmp.eq.s32.totalorder %s776_s0, 0  ;;  %p60_p3 = scmp.ne.s32.totalorder %s760_s16, %s756_s15 }
  0x11   : > { %s1028_s22 = smov (%p40_p0, %s38_s22), 0  ;;  %p61_p5 = scmp.eq.s32.totalorder %s480_s20, 0 }
  0x12   : > { %p853_p4 = por %p55_p2, %p54_p1  ;;  %s42_s25 = ssub.s32 %s772_s19, %s1028_s22 }
  0x13   : > { %p112_p6 = scmp.eq.s32.totalorder %s480_s20, 2  ;;  %p45_p7 = scmp.eq.s32.totalorder %s42_s25, 0 }
  0x14   : > { %p859_p8 = por %p61_p5, %p60_p3  ;;  %p118_p10 = scmp.eq.s32.totalorder %s481_s21, 2 }
  0x15   : > { %p863_p9 = por %p112_p6, %p54_p1  ;;  %p559_p12 = scmp.lt.s32.totalorder %s776_s0, 3 }
  0x16   : > { %s868_s28 = scalar_select %p45_p7, %s764_s17, %s47_s23  }
  0x17   : > { %p870_p11 = por %p118_p10, %p60_p3  ;;  %s876_s30 = sand.u32 1, %s764_s17  }
  0x18   : > { %s484_s4 = sshll.u32 %s876_s30, 3  ;;  %s510_s5 = sshll.u32 %s772_s19, 7 }
  0x19   : > { %s150_s8 = scalar_lea.hbm %s1013_s1, %s510_s5  ;;  %s142_s9 = scalar_lea.vmem [#allocation4], %s484_s4 }
  0x1a   : > { %s151_s10 = sshll.u32 %s142_s9, 4  ;;  %p885_p13 = pnand %p559_p12, %p853_p4  ;;  %s152_s10 = int_to_ptr.vmem [resolvable:$true] %s151_s10 }
  0x1b   : > { %p490_p0 = scmp.ge.s32.totalorder %s776_s0, 1  ;;  %s139_s12 = scalar_lea.sflag [#allocation5], %s876_s30 }
  0x1c   : > { %p636_p1 = pneg %p885_p13  ;;  %s647_s13 = scalar_lea.vmem %s152_s10, 128 }
  0x1d   : > { %p648_p2 = scmp.ne.s32.totalorder %s152_s10, %s647_s13  ;;  %s779_s14 = smov [#allocation4]  }
  0x1e   : > { %s652_s20 = sshll.u32 %s779_s14, 4  ;;  %s653_s20 = int_to_ptr.vmem [resolvable:$false] %s652_s20 }
  0x1f   : > { %p650_p3 = pnand %p648_p2, %p636_p1  ;;  %s654_s21 = scalar_lea.vmem %s653_s20, 256 }
  0x20   : > { %p655_p4 = scmp.lt.s32.totalorder %s152_s10, %s653_s20  ;;  %p656_p6 = scmp.lt.s32.totalorder %s654_s21, %s647_s13 }
  0x21   : > { %p651_p5 = pneg %p650_p3 }
  0x22   : > { %p657_p7 = por %p656_p6, %p655_p4 }
  0x24   : > { %p658_p10 = pnand %p657_p7, %p651_p5 }
  0x26   : > { %661 = shalt.err (!%p658_p10)
}
  0x27   : > { %s780_s23 = smov 64   ;;  %s781_s24 = smov 4  }
  0x28   : > { %551 = dma.hbm_to_vmem [thread:$0]  (!%p885_p13), %s150_s8, 128, %s152_s10, %s139_s12, %s780_s23, %s780_s23, %s781_s24  }
  0x29   : > { %p180_p12 = scmp.lt.s32.totalorder %s776_s0, 4  ;;  %s487_s25 = sshll.u32 %s876_s30, 6 }
  0x2a   : > { %s511_s4 = sshll.u32 %s772_s19, 10  ;;  %s165_s13 = scalar_lea.vmem [#allocation7], %s487_s25 }
  0x2b   : > { %p903_p2 = pnand %p490_p0, %p180_p12  ;;  %s171_s9 = scalar_lea.hbm %s1014_s2, %s511_s4 }
  0x2c   : > { %s172_s14 = sshll.u32 %s165_s13, 4  ;;  %s162_s20 = scalar_lea.sflag [#allocation8], %s876_s30  ;;  %s173_s14 = int_to_ptr.vmem [resolvable:$true] %s172_s14 }
  0x2d   : > { %s675_s21 = scalar_lea.vmem %s173_s14, 1024  ;;  %s782_s8 = smov [#allocation7]  }
  0x2e   : > { %p676_p3 = scmp.ne.s32.totalorder %s173_s14, %s675_s21  ;;  %s680_s10 = sshll.u32 %s782_s8, 4  ;;  %s681_s10 = int_to_ptr.vmem [resolvable:$false] %s680_s10 }
  0x2f   : > { %s682_s12 = scalar_lea.vmem %s681_s10, 2048  ;;  %p683_p0 = scmp.lt.s32.totalorder %s173_s14, %s681_s10 }
  0x30   : > { %p678_p5 = pnand %p676_p3, %p636_p1  ;;  %p684_p6 = scmp.lt.s32.totalorder %s682_s12, %s675_s21 }
  0x32   : > { %p679_p4 = pneg %p678_p5  ;;  %p685_p7 = por %p684_p6, %p683_p0 }
  0x34   : > { %p686_p10 = pnand %p685_p7, %p679_p4 }
  0x36   : > { %689 = shalt.err (!%p686_p10)
}
  0x37   : > { %554 = dma.hbm_to_vmem [thread:$0]  (!%p885_p13), %s171_s9, 1024, %s173_s14, %s162_s20, %s780_s23, %s780_s23, %s781_s24  }
  0x38   : > { %184 = sbr.rel (%p903_p2) target bundleno = 343 (0x157), region = 28  ;;  %s919_s30 = sand.u32 (!%p903_p2), 1, %s760_s16  }
  0x39   : > { %s491_s25 = sshll.u32 (!%p903_p2), %s919_s30, 3  ;;  %s187_s4 = scalar_lea.sflag (!%p903_p2), [#allocation5], %s919_s30 }
  0x3a   : > { %s923_s6 = scalar_lea.vmem (!%p903_p2), [#allocation4], %s491_s25 }
  0x3d   : > { %743 = dma.done.wait (%p859_p8), %s187_s4, 128  }
  0x3e   : > { %745 = vsyncadd (%p859_p8), %s187_s4, 4294967168  ;;  %s492_s11 = sshll.u32 %s919_s30, 6  ;;  %s196_s23 = scalar_lea.sflag [#allocation8], %s919_s30 }
  0x3f   : > { %s931_s24 = scalar_lea.vmem [#allocation7], %s492_s11 }
  0x40   : > { %747 = dma.done.wait (%p859_p8), %s196_s23, 1024  }
  0x41   : > { %749 = vsyncadd (%p859_p8), %s196_s23, 4294966272  ;;  %s493_s5 = sshll.u32 %s919_s30, 4  ;;  %s939_s7 = sld [smem:[#allocation3 + %s768_s18]] }
  0x42   : > { %s941_s9 = scalar_lea.vmem [#allocation9], %s493_s5 }
  0x47   : > { %p494_p13 = scmp.ne.s32.totalorder %s939_s7, 1 }
  0x49   : > { %232 = sbr.rel (%p494_p13) target bundleno = 310 (0x136), region = 40 }
  0x4e   : > { %v617_v0 = vld [vmem:[%s931_s24 + $0x38] sm:$0xff]   ;;  %v783_v1 = vmov 0.0   ;;  %v618_v2 = vld [vmem:[%s931_s24 + $0x30] sm:$0xff]   ;;  %vm784_vm0 = vmmov 0   ;;  %v619_v3 = vld [vmem:[%s931_s24 + $0x28] sm:$0xff]  }
  0x4f   : > { %522 = vmatprep.subr.bf16.mxu0 %v783_v1  ;;  %538 = vmatprep.mubr.msk.bf16.mxu0 %vm784_vm0, %v783_v1  ;;  %v620_v4 = vld [vmem:[%s931_s24 + $0x20] sm:$0xff]   ;;  %v621_v5 = vld [vmem:[%s931_s24 + $0x18] sm:$0xff]   ;;  %v622_v6 = vld [vmem:[%s931_s24 + $0x10] sm:$0xff]  }
  0x50   : > { %523 = vmatpush3.bf16.msra.mxu0 %v617_v0  ;;  %v623_v7 = vld [vmem:[%s931_s24 + $0x8] sm:$0xff]   ;;  %v624_v8 = vld [vmem:[%s931_s24] sm:$0xff]   ;;  %v625_v9 = vld [vmem:[%s923_s6] sm:$0xff]  }
  0x51   : > { %524 = vmatprep.subr.bf16.mxu0 %v783_v1 }
  0x54   : > { %525 = vmatpush3.bf16.msra.mxu0 %v618_v2 }
  0x55   : > { %526 = vmatprep.subr.bf16.mxu0 %v783_v1 }
  0x58   : > { %527 = vmatpush3.bf16.msra.mxu0 %v619_v3 }
  0x59   : > { %528 = vmatprep.subr.bf16.mxu0 %v783_v1 }
  0x5c   : > { %529 = vmatpush3.bf16.msra.mxu0 %v620_v4 }
  0x5d   : > { %530 = vmatprep.subr.bf16.mxu0 %v783_v1 }
  0x60   : > { %531 = vmatpush3.bf16.msra.mxu0 %v621_v5 }
  0x61   : > { %532 = vmatprep.subr.bf16.mxu0 %v783_v1 }
  0x64   : > { %533 = vmatpush3.bf16.msra.mxu0 %v622_v6 }
  0x65   : > { %534 = vmatprep.subr.bf16.mxu0 %v783_v1 }
  0x68   : > { %535 = vmatpush3.bf16.msra.mxu0 %v623_v7 }
  0x69   : > { %536 = vmatprep.subr.bf16.mxu0 %v783_v1 }
  0x6c   : > { %537 = vmatpush3.bf16.msra.mxu0 %v624_v8 }
  0x6f   : > { %539 = vmatmul.mubr.bf16.vlgmr.msra.gmra.mxu0 %v625_v9 }
 0x12f   : > { %v339_v10 = vpop.f32.mrf.mxu0 }
 0x130   : > { %346 = vst [vmem:[%s941_s9] sm:$0xff] %v339_v10 }
 0x131   : > { %v540_v11 = vpop.f32.mrf.mxu0 }
 0x133   : > { %v342_v12 = vpop.f32.mrf.mxu0 }
 0x134   : > { %347 = vst [vmem:[%s941_s9 + $0x8] sm:$0xff] %v342_v12 }
 0x135   : > { %v541_v13 = vpop.f32.mrf.mxu0 }
 0x136 PF: > { %p504_p8 = scmp.eq.s32.totalorder %s939_s7, 1 }
 0x138   : > { %351 = sbr.rel (%p504_p8) target bundleno = 319 (0x13f), region = 44 }
 0x13d   : > { %v785_v14 = vmov 0.0  }
 0x13e   : > { %352 = vst [vmem:[%s941_s9] sm:$0xff] %v785_v14  ;;  %353 = vst [vmem:[%s941_s9 + $0x8] sm:$0xff] %v785_v14 }
 0x13f PF: > { %s512_s26 = sshll.u32 %s768_s18, 8  ;;  %s370_s21 = sshll.u32 %s941_s9, 4  ;;  %s965_s21 = int_to_ptr.vmem [resolvable:$true] %s370_s21 }
 0x140   : > { %s962_s20 = scalar_lea.hbm %s1015_s3, %s512_s26  ;;  %s355_s8 = scalar_lea.sflag [#allocation6], %s919_s30 }
 0x141   : > { %s690_s10 = scalar_lea.vmem %s965_s21, 256  ;;  %s786_s12 = smov [#allocation9]  }
 0x142   : > { %p691_p1 = scmp.ne.s32.totalorder %s965_s21, %s690_s10  ;;  %s694_s25 = sshll.u32 %s786_s12, 4  ;;  %s695_s25 = int_to_ptr.vmem [resolvable:$false] %s694_s25 }
 0x143   : > { %s696_s18 = scalar_lea.vmem %s695_s25, 512  ;;  %p697_p3 = scmp.lt.s32.totalorder %s965_s21, %s695_s25 }
 0x144   : > { %p692_p12 = pnand %p691_p1, %p863_p9  ;;  %p698_p5 = scmp.lt.s32.totalorder %s696_s18, %s690_s10 }
 0x146   : > { %p693_p2 = pneg %p692_p12  ;;  %p699_p4 = por %p698_p5, %p697_p3 }
 0x148   : > { %p700_p0 = pnand %p699_p4, %p693_p2 }
 0x14a   : > { %703 = shalt.err (!%p700_p0)
}
 0x14b   : > { %s704_s4 = scalar_lea.hbm %s962_s20, 256  ;;  %s708_s23 = scalar_lea.hbm %s1015_s3, 768 }
 0x14c   : > { %p705_p6 = scmp.ne.s32.totalorder %s962_s20, %s704_s4  ;;  %p709_p13 = scmp.lt.s32.totalorder %s962_s20, %s1015_s3 }
 0x14d   : > { %p710_p8 = scmp.lt.s32.totalorder %s708_s23, %s704_s4 }
 0x14e   : > { %p706_p7 = pnand %p705_p6, %p863_p9 }
 0x14f   : > { %p711_p1 = por %p710_p8, %p709_p13 }
 0x150   : > { %p707_p10 = pneg %p706_p7 }
 0x152   : > { %p712_p12 = pnand %p711_p1, %p707_p10 }
 0x154   : > { %715 = shalt.err (!%p712_p12)
}
 0x155   : > { %s787_s7 = smov 128   ;;  %s788_s9 = smov 8  }
 0x156   : > { %546 = dma.vmem_to_hbm [thread:$0]  (%p863_p9), %s965_s21, 256, %s962_s20, %s355_s8, %s787_s7, %s787_s7, %s788_s9  }
 0x157 PF: > { %p560_p2 = scmp.ge.s32.totalorder %s776_s0, 2  ;;  %s385_s26 = sand.u32 1, %s756_s15  }
 0x158   : > { %s386_s13 = scalar_lea.sflag [#allocation6], %s385_s26 }
 0x159   : > { %p556_p3 = pnand %p560_p2, %p870_p11 }
 0x15b   : > { %p557_p5 = pneg %p556_p3 }
 0x15d   : > { %751 = dma.done.wait (%p557_p5), %s386_s13, 256  }
 0x15e   : > { %753 = vsyncadd (%p557_p5), %s386_s13, 4294967040  ;;  %s26_s0 = sadd.s32 1, %s776_s0   ;;  %s1022_s15 = smov %s760_s16 }
 0x15f   : > { %p23_p4 = scmp.ge.s32.totalorder %s26_s0, 5   ;;  %s1023_s16 = smov %s764_s17 }
 0x160   : > { %s1024_s17 = smov %s868_s28  ;;  %s1025_s18 = smov %s772_s19 }
 0x161   : > { %s1026_s19 = smov %s1028_s22  ;;  %25 = sbr.rel (!%p23_p4) target bundleno = 13 (0xd), region = 94 }
 0x166   :  { %391 = vsyncpa [#allocation5], 1 }
 0x167   :  { %393 = vsyncpa [#allocation5 + $0x1], 1 }
 0x168   :  { %394 = vsyncpa [#allocation8], 1 }
 0x169   :  { %396 = vsyncpa [#allocation8 + $0x1], 1 }
 0x16a   :  { %397 = vsyncpa [#allocation6], 1 }
 0x16b   :  { %399 = vsyncpa [#allocation6 + $0x1], 1 }

</bundles_post_ra>
